<compile_context>
chip_gen: v7x
topology: tpu7x:2x2x1
jax: 0.10.0
libtpu: 0.0.40
codegen_flags: <defaults>
</compile_context>

<pallas_src>
import jax
import jax.numpy as jnp
from jax.experimental import pallas as pl
from jax.experimental.pallas import tpu as pltpu


def _ssvaer_recon_kernel(x_ref, xh_ref, xgh_ref, out_ref, acc_ref):
    """Accumulates sum((x_hat-x)^2) and sum((x_gen_hat-x)^2) over row blocks.

    acc_ref: SMEM (2,) f32 scalar accumulators (0: hat, 1: gen).
    out_ref: (8, 128) f32 block per partition; written once at the last
             reduction step with the two sums packed in row 0, lanes 0..1.
    """
    k = pl.program_id(1)

    @pl.when(k == 0)
    def _init():
        acc_ref[0] = jnp.float32(0.0)
        acc_ref[1] = jnp.float32(0.0)

    # Streamed in native dtype from HBM; cast to f32 per tile for the math.
    x = x_ref[...].astype(jnp.float32)
    d_hat = xh_ref[...].astype(jnp.float32) - x
    d_gen = xgh_ref[...].astype(jnp.float32) - x
    acc_ref[0] += jnp.sum(d_hat * d_hat)
    acc_ref[1] += jnp.sum(d_gen * d_gen)

    @pl.when(k == pl.num_programs(1) - 1)
    def _finalize():
        row = jax.lax.broadcasted_iota(jnp.int32, (8, 128), 0)
        lane = jax.lax.broadcasted_iota(jnp.int32, (8, 128), 1)
        out_ref[...] = jnp.where(
            (row == 0) & (lane == 0), acc_ref[0],
            jnp.where((row == 0) & (lane == 1), acc_ref[1], jnp.float32(0.0)))


def _round_up(n, m):
    return ((n + m - 1) // m) * m


def _hw_config():
    """Per-generation streaming block budget, VMEM limit, and TC split."""
    target_bytes, vmem_limit = 4 << 20, 32 << 20       # conservative fallback
    two_cores = False
    try:
        kind = getattr(jax.devices()[0], "device_kind", "").lower()
        two_cores = "v7" in kind                        # v7x: 2 TensorCores/chip
    except Exception:
        pass
    try:
        vmem = pltpu.get_tpu_info().vmem_capacity_bytes
        if vmem >= (96 << 20):                          # v5e / v6e: 128 MiB VMEM
            target_bytes, vmem_limit = 8 << 20, 64 << 20
        else:                                           # v7x-class: 64 MiB VMEM
            target_bytes, vmem_limit = 3 << 20, 28 << 20
    except Exception:
        pass
    return target_bytes, vmem_limit, two_cores


def ssvaer_loss(x, x_hat, z_mu, z_logvar, z_gen, y_mu, y_logvar, y, x_gen_hat,
                reduction='mean', lanes=512, block_rows=None):
    """JAX/Pallas equivalent of SSVAERLoss.forward.

    Returns (total, reconstruction, kld, label, label_mse), matching the
    PyTorch module ('mean' MSE reconstruction; 'mean' or 'sum' KLD reduction).
    """
    assert lanes % 128 == 0
    dtype = x.dtype
    itemsize = jnp.dtype(dtype).itemsize
    n_elems = x.size                              # true element count (B*C*H*W)

    target_bytes, vmem_limit, two_cores = _hw_config()

    # Row tile: sublane-dense, multiple of 16 (covers f32 and bf16 packing),
    # sized so one (tr, lanes) block of one streamed input is ~target_bytes.
    rows_needed = -(-n_elems // lanes)
    if block_rows is None:
        budget_rows = max(16, (target_bytes // (lanes * itemsize)) // 16 * 16)
        tr = min(budget_rows, _round_up(rows_needed, 16))
    else:
        assert block_rows % 8 == 0
        tr = block_rows

    n_par = 2 if two_cores else 1                 # 2-way only on 2-TC chips
    rows_pad = _round_up(rows_needed, n_par * tr)
    n_tiles = rows_pad // tr
    n_seq = n_tiles // n_par
    n_pad_elems = rows_pad * lanes

    def to_slab(t):
        v = t.reshape(-1)
        if n_pad_elems != n_elems:
            # Zero padding contributes 0 to both squared-difference sums.
            v = jnp.pad(v, (0, n_pad_elems - n_elems))
        return v.reshape(rows_pad, lanes)

    x_s, xh_s, xgh_s = to_slab(x), to_slab(x_hat), to_slab(x_gen_hat)

    def row_map(p, k):
        return (p * n_seq + k, 0)

    if two_cores and n_par == 2:
        dims = (pltpu.CORE_PARALLEL, pltpu.ARBITRARY)
    else:
        dims = (pltpu.ARBITRARY, pltpu.ARBITRARY)

    # TODO(synk): if xprof shows exposed DMA on v7x at this block size, sweep
    # pipeline_mode=pl.Buffered(3) on the three streamed in_specs (re-budget
    # VMEM: 3 inputs x 3 buffers x block must stay under vmem_limit).
    parts = pl.pallas_call(
        _ssvaer_recon_kernel,
        out_shape=jax.ShapeDtypeStruct((n_par * 8, 128), jnp.float32),
        grid=(n_par, n_seq),
        in_specs=[
            pl.BlockSpec((tr, lanes), row_map),
            pl.BlockSpec((tr, lanes), row_map),
            pl.BlockSpec((tr, lanes), row_map),
        ],
        out_specs=pl.BlockSpec((8, 128), lambda p, k: (p, 0)),
        scratch_shapes=[pltpu.SMEM((2,), jnp.float32)],
        compiler_params=pltpu.CompilerParams(
            dimension_semantics=dims,
            vmem_limit_bytes=vmem_limit),
        cost_estimate=pl.CostEstimate(
            flops=6 * n_pad_elems,
            transcendentals=0,
            bytes_accessed=3 * n_pad_elems * itemsize + n_par * 8 * 128 * 4),
    )(x_s, xh_s, xgh_s)

    # Only row 0 of each partition block is nonzero; sum over partitions.
    sse_hat = jnp.sum(parts[:, 0])
    sse_gen = jnp.sum(parts[:, 1])
    recon = (sse_hat + sse_gen) / n_elems

    # Tiny O(B*Z) / O(B*Y) terms: plain XLA (negligible work; keeping them out
    # of the kernel frees VMEM for bigger streamed blocks).
    kld_per = -0.5 * jnp.sum(
        1.0 + z_logvar - (z_mu - z_gen) ** 2 - jnp.exp(z_logvar), axis=1)
    kld = jnp.mean(kld_per) if reduction == 'mean' else jnp.sum(kld_per)

    diff2 = (y_mu - y) ** 2
    label = jnp.mean(-0.5 + 0.5 * diff2 / jnp.exp(y_logvar) + y_logvar)
    lmse = jnp.mean(diff2)

    total = recon + kld + label
    return total, recon, kld, label, lmse


def _reference(x, x_hat, z_mu, z_logvar, z_gen, y_mu, y_logvar, y, x_gen_hat,
               reduction='mean'):
    B = x.shape[0]
    xf, xhf, xgf = (t.reshape(B, -1) for t in (x, x_hat, x_gen_hat))
    recon = jnp.mean((xhf - xf) ** 2) + jnp.mean((xgf - xf) ** 2)
    kld_per = -0.5 * jnp.sum(
        1 + z_logvar - (z_mu - z_gen) ** 2 - jnp.exp(z_logvar), axis=1)
    kld = jnp.mean(kld_per) if reduction == 'mean' else jnp.sum(kld_per)
    label = jnp.mean(-0.5 + 0.5 * (y_mu - y) ** 2 / jnp.exp(y_logvar) + y_logvar)
    lmse = jnp.mean((y_mu - y) ** 2)
    return recon + kld + label, recon, kld, label, lmse


if __name__ == "__main__":
    key = jax.random.PRNGKey(0)
    B, C, H, W = 2, 4, 16, 16
    Z, Y = 32, 1

    ks = jax.random.split(key, 9)
    x = jax.random.normal(ks[0], (B, C, H, W), jnp.float32)
    x_hat = jax.random.normal(ks[1], (B, C, H, W), jnp.float32)
    x_gen_hat = jax.random.normal(ks[2], (B, C, H, W), jnp.float32)
    z_mu = jax.random.normal(ks[3], (B, Z), jnp.float32)
    z_logvar = 0.1 * jax.random.normal(ks[4], (B, Z), jnp.float32)
    z_gen = jax.random.normal(ks[5], (B, Z), jnp.float32)
    y_mu = jax.random.normal(ks[6], (B, Y), jnp.float32)
    y_logvar = 0.1 * jax.random.normal(ks[7], (B, Y), jnp.float32)
    y = jax.random.normal(ks[8], (B, Y), jnp.float32)

    args = (x, x_hat, z_mu, z_logvar, z_gen, y_mu, y_logvar, y, x_gen_hat)

    # 1) auto tiling (dense (rows, 512) slab, single row block, pad exercised).
    out_auto = jax.block_until_ready(ssvaer_loss(*args))
    # 2) forced multi-tile path: lanes=128, 8-row blocks -> 2+ reduction steps,
    #    exercising SMEM init / accumulation / last-step finalize.
    out_tiled = jax.block_until_ready(ssvaer_loss(*args, lanes=128, block_rows=8))
    # 3) 'sum' KLD reduction path.
    out_sum = jax.block_until_ready(ssvaer_loss(*args, reduction='sum'))

    ref_mean = _reference(*args, reduction='mean')
    ref_sum = _reference(*args, reduction='sum')

    for out, ref in ((out_auto, ref_mean), (out_tiled, ref_mean),
                     (out_sum, ref_sum)):
        for got, want in zip(out, ref):
            assert jnp.allclose(got, want, rtol=1e-5, atol=1e-5), (got, want)

    print("KERNEL_OK")
</pallas_src>

<mosaic_0001>
module attributes {stable_mosaic.version = 11 : i64} {
  func.func @_ssvaer_recon_kernel(%arg0: i32, %arg1: i32, %arg2: memref<16x512xf32, #tpu.memory_space<vmem>>, %arg3: memref<16x512xf32, #tpu.memory_space<vmem>>, %arg4: memref<16x512xf32, #tpu.memory_space<vmem>>, %arg5: memref<8x128xf32, #tpu.memory_space<vmem>>, %arg6: memref<2xf32, #tpu.memory_space<smem>>) attributes {dimension_semantics = [#tpu.dimension_semantics<arbitrary>, #tpu.dimension_semantics<arbitrary>], iteration_bounds = array<i64: 1, 1>, scalar_prefetch = 0 : i64, scratch_operands = 1 : i64, tpu.core_type = #tpu.core_type<tc>, window_params = [{transform_indices = @transform_0, window_bounds = array<i64: 16, 512>}, {transform_indices = @transform_1, window_bounds = array<i64: 16, 512>}, {transform_indices = @transform_2, window_bounds = array<i64: 16, 512>}, {transform_indices = @transform_3, window_bounds = array<i64: 8, 128>}]} {
    %c0_i32 = arith.constant 0 : i32
    %0 = arith.cmpi eq, %arg1, %c0_i32 : i32
    %1 = arith.extui %0 : i1 to i32
    %c0_i32_0 = arith.constant 0 : i32
    %2 = arith.cmpi ne, %1, %c0_i32_0 : i32
    scf.if %2 {
      %cst_12 = arith.constant 0.000000e+00 : f32
      %c0_13 = arith.constant 0 : index
      %27 = memref.load %arg6[%c0_13] : memref<2xf32, #tpu.memory_space<smem>>
      memref.store %cst_12, %arg6[%c0_13] : memref<2xf32, #tpu.memory_space<smem>>
      %cst_14 = arith.constant 0.000000e+00 : f32
      %c1_15 = arith.constant 1 : index
      %28 = memref.load %arg6[%c1_15] : memref<2xf32, #tpu.memory_space<smem>>
      memref.store %cst_14, %arg6[%c1_15] : memref<2xf32, #tpu.memory_space<smem>>
    } else {
    }
    %c0 = arith.constant 0 : index
    %c0_1 = arith.constant 0 : index
    %3 = vector.load %arg2[%c0, %c0_1] : memref<16x512xf32, #tpu.memory_space<vmem>>, vector<16x512xf32>
    %c0_2 = arith.constant 0 : index
    %c0_3 = arith.constant 0 : index
    %4 = vector.load %arg3[%c0_2, %c0_3] : memref<16x512xf32, #tpu.memory_space<vmem>>, vector<16x512xf32>
    %5 = arith.subf %4, %3 : vector<16x512xf32>
    %c0_4 = arith.constant 0 : index
    %c0_5 = arith.constant 0 : index
    %6 = vector.load %arg4[%c0_4, %c0_5] : memref<16x512xf32, #tpu.memory_space<vmem>>, vector<16x512xf32>
    %7 = arith.subf %6, %3 : vector<16x512xf32>
    %c0_6 = arith.constant 0 : index
    %8 = memref.load %arg6[%c0_6] : memref<2xf32, #tpu.memory_space<smem>>
    %9 = arith.mulf %5, %5 : vector<16x512xf32>
    %10 = vector.shape_cast %9 : vector<16x512xf32> to vector<1x16x512xf32>
    %cst = arith.constant dense<0.000000e+00> : vector<1xf32>
    %11 = vector.multi_reduction <add>, %10, %cst [1, 2] : vector<1x16x512xf32> to vector<1xf32>
    %12 = vector.shape_cast %11 : vector<1xf32> to vector<1x1x1xf32>
    %13 = vector.extract %12[0, 0, 0] : f32 from vector<1x1x1xf32>
    %14 = arith.addf %8, %13 : f32
    %c0_7 = arith.constant 0 : index
    %15 = memref.load %arg6[%c0_7] : memref<2xf32, #tpu.memory_space<smem>>
    memref.store %14, %arg6[%c0_7] : memref<2xf32, #tpu.memory_space<smem>>
    %c1 = arith.constant 1 : index
    %16 = memref.load %arg6[%c1] : memref<2xf32, #tpu.memory_space<smem>>
    %17 = arith.mulf %7, %7 : vector<16x512xf32>
    %18 = vector.shape_cast %17 : vector<16x512xf32> to vector<1x16x512xf32>
    %cst_8 = arith.constant dense<0.000000e+00> : vector<1xf32>
    %19 = vector.multi_reduction <add>, %18, %cst_8 [1, 2] : vector<1x16x512xf32> to vector<1xf32>
    %20 = vector.shape_cast %19 : vector<1xf32> to vector<1x1x1xf32>
    %21 = vector.extract %20[0, 0, 0] : f32 from vector<1x1x1xf32>
    %22 = arith.addf %16, %21 : f32
    %c1_9 = arith.constant 1 : index
    %23 = memref.load %arg6[%c1_9] : memref<2xf32, #tpu.memory_space<smem>>
    memref.store %22, %arg6[%c1_9] : memref<2xf32, #tpu.memory_space<smem>>
    %c0_i32_10 = arith.constant 0 : i32
    %24 = arith.cmpi eq, %arg1, %c0_i32_10 : i32
    %25 = arith.extui %24 : i1 to i32
    %c0_i32_11 = arith.constant 0 : i32
    %26 = arith.cmpi ne, %25, %c0_i32_11 : i32
    scf.if %26 {
      %27 = tpu.iota {dimensions = array<i32: 0>} : vector<8x128xi32>
      %28 = tpu.iota {dimensions = array<i32: 1>} : vector<8x128xi32>
      %c0_i32_12 = arith.constant 0 : i32
      %29 = vector.broadcast %c0_i32_12 : i32 to vector<8x128xi32>
      %30 = arith.cmpi eq, %27, %29 : vector<8x128xi32>
      %c0_i32_13 = arith.constant 0 : i32
      %31 = vector.broadcast %c0_i32_13 : i32 to vector<8x128xi32>
      %32 = arith.cmpi eq, %28, %31 : vector<8x128xi32>
      %33 = arith.andi %30, %32 : vector<8x128xi1>
      %c0_14 = arith.constant 0 : index
      %34 = memref.load %arg6[%c0_14] : memref<2xf32, #tpu.memory_space<smem>>
      %c0_i32_15 = arith.constant 0 : i32
      %35 = vector.broadcast %c0_i32_15 : i32 to vector<8x128xi32>
      %36 = arith.cmpi eq, %27, %35 : vector<8x128xi32>
      %c1_i32 = arith.constant 1 : i32
      %37 = vector.broadcast %c1_i32 : i32 to vector<8x128xi32>
      %38 = arith.cmpi eq, %28, %37 : vector<8x128xi32>
      %39 = arith.andi %36, %38 : vector<8x128xi1>
      %c1_16 = arith.constant 1 : index
      %40 = memref.load %arg6[%c1_16] : memref<2xf32, #tpu.memory_space<smem>>
      %cst_17 = arith.constant 0.000000e+00 : f32
      %41 = vector.broadcast %40 : f32 to vector<8x128xf32>
      %42 = vector.broadcast %cst_17 : f32 to vector<8x128xf32>
      %43 = arith.select %39, %41, %42 : vector<8x128xi1>, vector<8x128xf32>
      %44 = vector.broadcast %34 : f32 to vector<8x128xf32>
      %45 = arith.select %33, %44, %43 : vector<8x128xi1>, vector<8x128xf32>
      %c0_18 = arith.constant 0 : index
      %c0_19 = arith.constant 0 : index
      %46 = vector.load %arg5[%c0_18, %c0_19] : memref<8x128xf32, #tpu.memory_space<vmem>>, vector<8x128xf32>
      tpu.vector_store %arg5[%c0_18, %c0_19], %45 {strides = array<i32>} : memref<8x128xf32, #tpu.memory_space<vmem>>, vector<8x128xf32>,
    } else {
    }
    return
  }
  func.func @transform_0(%arg0: i32, %arg1: i32) -> (i32, i32) {
    %c1_i32 = arith.constant 1 : i32
    %0 = arith.muli %arg0, %c1_i32 : i32
    %1 = arith.addi %0, %arg1 : i32
    %c0_i32 = arith.constant 0 : i32
    %c0_i32_0 = arith.constant 0 : i32
    return %1, %c0_i32 : i32, i32
  }
  func.func @transform_1(%arg0: i32, %arg1: i32) -> (i32, i32) {
    %c1_i32 = arith.constant 1 : i32
    %0 = arith.muli %arg0, %c1_i32 : i32
    %1 = arith.addi %0, %arg1 : i32
    %c0_i32 = arith.constant 0 : i32
    %c0_i32_0 = arith.constant 0 : i32
    return %1, %c0_i32 : i32, i32
  }
  func.func @transform_2(%arg0: i32, %arg1: i32) -> (i32, i32) {
    %c1_i32 = arith.constant 1 : i32
    %0 = arith.muli %arg0, %c1_i32 : i32
    %1 = arith.addi %0, %arg1 : i32
    %c0_i32 = arith.constant 0 : i32
    %c0_i32_0 = arith.constant 0 : i32
    return %1, %c0_i32 : i32, i32
  }
  func.func @transform_3(%arg0: i32, %arg1: i32) -> (i32, i32) {
    %c0_i32 = arith.constant 0 : i32
    %c0_i32_0 = arith.constant 0 : i32
    return %arg0, %c0_i32 : i32, i32
  }
}

</mosaic_0001>

<bundles_post_ra>
// kernel: tpu_custom_call.1
= control target key start
LH: loop header
LB: loop body
LE: loop exit
PB: predicated region body
PF: predicated region fallthrough
CT: control target
= control target key end

     0   :  { %8 = vsyncpa [#allocation4], 0  ;;  %s412_s0 = inlined_call_operand.hbm [shape: f32[16,512], index: 0, kind: input, shape index: {}]   ;;  %s413_s1 = inlined_call_operand.hbm [shape: f32[16,512], index: 1, kind: input, shape index: {}]   ;;  %s414_s2 = inlined_call_operand.hbm [shape: f32[16,512], index: 2, kind: input, shape index: {}]   ;;  %s415_s3 = inlined_call_operand.hbm [shape: f32[8,128], index: 3, kind: output, shape index: {}]  }
   0x1   :  { %9 = vsyncpa [#allocation7], 0 }
   0x2   :  { %10 = vsyncpa [#allocation5], 0  ;;  %s322_s12 = smov [#allocation6]   ;;  %s323_s14 = smov [#allocation3]  }
   0x3   :  { %s38_s13 = sshll.u32 %s322_s12, 4  ;;  %s21_s15 = sshll.u32 %s323_s14, 4  ;;  %s39_s13 = int_to_ptr.vmem [resolvable:$true] %s38_s13  ;;  %s348_s15 = int_to_ptr.vmem [resolvable:$true] %s21_s15 }
   0x4   :  { %s228_s18 = scalar_lea.hbm %s413_s1, 1024 }
   0x5   :  { %p229_p0 = scmp.ne.s32.totalorder %s413_s1, %s228_s18  ;;  %p232_p1 = scmp.lt.u32.totalorder %s228_s18, %s413_s1 }
   0x7   :  { %p234_p2 = pnand %p232_p1, %p229_p0 }
   0x9   :  { %237 = shalt.err (!%p234_p2)
}
   0xa   :  { %s238_s23 = scalar_lea.vmem %s39_s13, 1024  ;;  %p243_p4 = scmp.lt.s32.totalorder %s39_s13, %s39_s13 }
   0xb   :  { %p239_p3 = scmp.ne.s32.totalorder %s39_s13, %s238_s23  ;;  %p244_p5 = scmp.lt.s32.totalorder %s238_s23, %s238_s23 }
   0xd   :  { %p245_p6 = por %p244_p5, %p243_p4 }
   0xf   :  { %p246_p7 = pnand %p245_p6, %p239_p3 }
  0x11   :  { %249 = shalt.err (!%p246_p7)
}
  0x12   :  { %s324_s24 = smov 512   ;;  %s325_s25 = smov 32  }
  0x13   :  { %44 = dma.hbm_to_vmem [thread:$0]  %s413_s1, 1024, %s39_s13, [#allocation7], %s324_s24, %s324_s24, %s325_s25  }
  0x14   :  { %s250_s30 = scalar_lea.hbm %s412_s0, 1024 }
  0x15   :  { %p251_p8 = scmp.ne.s32.totalorder %s412_s0, %s250_s30  ;;  %p254_p9 = scmp.lt.u32.totalorder %s250_s30, %s412_s0 }
  0x17   :  { %p256_p10 = pnand %p254_p9, %p251_p8 }
  0x19   :  { %259 = shalt.err (!%p256_p10)
}
  0x1a   :  { %s260_s8 = scalar_lea.vmem %s348_s15, 1024  ;;  %p265_p12 = scmp.lt.s32.totalorder %s348_s15, %s348_s15 }
  0x1b   :  { %p261_p11 = scmp.ne.s32.totalorder %s348_s15, %s260_s8  ;;  %p266_p13 = scmp.lt.s32.totalorder %s260_s8, %s260_s8 }
  0x1d   :  { %p267_p0 = por %p266_p13, %p265_p12 }
  0x1f   :  { %p268_p1 = pnand %p267_p0, %p261_p11 }
  0x21   :  { %271 = shalt.err (!%p268_p1)
}
  0x22   :  { %27 = dma.hbm_to_vmem [thread:$0]  %s412_s0, 1024, %s348_s15, [#allocation4], %s324_s24, %s324_s24, %s325_s25  }
  0x23   :  { %s326_s10 = smov [#allocation8]   ;;  %s272_s14 = scalar_lea.hbm %s414_s2, 1024 }
  0x24   :  { %s55_s11 = sshll.u32 %s326_s10, 4  ;;  %p273_p2 = scmp.ne.s32.totalorder %s414_s2, %s272_s14  ;;  %s56_s11 = int_to_ptr.vmem [resolvable:$true] %s55_s11 }
  0x25   :  { %p276_p3 = scmp.lt.u32.totalorder %s272_s14, %s414_s2 }
  0x27   :  { %p278_p4 = pnand %p276_p3, %p273_p2 }
  0x29   :  { %281 = shalt.err (!%p278_p4)
}
  0x2a   :  { %s282_s20 = scalar_lea.vmem %s56_s11, 1024  ;;  %p287_p6 = scmp.lt.s32.totalorder %s56_s11, %s56_s11 }
  0x2b   :  { %p283_p5 = scmp.ne.s32.totalorder %s56_s11, %s282_s20  ;;  %p288_p7 = scmp.lt.s32.totalorder %s282_s20, %s282_s20 }
  0x2d   :  { %p289_p8 = por %p288_p7, %p287_p6 }
  0x2f   :  { %p290_p9 = pnand %p289_p8, %p283_p5 }
  0x31   :  { %293 = shalt.err (!%p290_p9)
}
  0x32   :  { %61 = dma.hbm_to_vmem [thread:$0]  %s414_s2, 1024, %s56_s11, [#allocation7], %s324_s24, %s324_s24, %s325_s25  }
  0x33   :  { %316 = dma.done.wait [#allocation4], 1024  }
  0x34   :  { %317 = vsyncadd [#allocation4], 4294966272 }
  0x35   :  { %318 = dma.done.wait [#allocation7], 2048  }
  0x36   :  { %319 = vsyncadd [#allocation7], 4294965248  ;;  %v85_v0 = vld [vmem:[#allocation3] sm:$0xff]  ;;  %v86_v1 = vld [vmem:[#allocation3 + $0x8] sm:$0xff]  ;;  %s327_s21 = smov [#allocation9]  }
  0x37   :  { %v87_v2 = vld [vmem:[#allocation3 + $0x10] sm:$0xff]  ;;  %v88_v3 = vld [vmem:[#allocation3 + $0x18] sm:$0xff]  ;;  %v89_v4 = vld [vmem:[#allocation3 + $0x20] sm:$0xff]  ;;  %s206_s22 = sshll.u32 %s327_s21, 4  ;;  %s207_s22 = int_to_ptr.vmem [resolvable:$true] %s206_s22 }
  0x38   :  { %v93_v5 = vld [vmem:[#allocation6] sm:$0xff]  ;;  %v94_v6 = vld [vmem:[#allocation6 + $0x8] sm:$0xff]  ;;  %v95_v7 = vld [vmem:[#allocation6 + $0x10] sm:$0xff]  ;;  %s294_s24 = scalar_lea.vmem %s207_s22, 128  ;;  %p299_p11 = scmp.lt.s32.totalorder %s207_s22, %s207_s22 }
  0x39   :  { %v96_v8 = vld [vmem:[#allocation6 + $0x18] sm:$0xff]  ;;  %v101_v9 = vsub.f32 %v93_v5, %v85_v0  ;;  %v90_v10 = vld [vmem:[#allocation3 + $0x28] sm:$0xff]  ;;  %v97_v11 = vld [vmem:[#allocation6 + $0x20] sm:$0xff]  ;;  %v102_v13 = vsub.f32 %v94_v6, %v86_v1  ;;  %v103_v14 = vsub.f32 %v95_v7, %v87_v2  ;;  %p295_p10 = scmp.ne.s32.totalorder %s207_s22, %s294_s24  ;;  %p300_p12 = scmp.lt.s32.totalorder %s294_s24, %s294_s24 }
  0x3a   :  { %v98_v12 = vld [vmem:[#allocation6 + $0x28] sm:$0xff]  ;;  %v104_v15 = vsub.f32 %v96_v8, %v88_v3  ;;  %v91_v16 = vld [vmem:[#allocation3 + $0x30] sm:$0xff]  ;;  %v105_v17 = vsub.f32 %v97_v11, %v89_v4  ;;  %v109_v19 = vld [vmem:[#allocation8] sm:$0xff] }
  0x3b   :  { %v126_v18 = vmul.f32 %v101_v9, %v101_v9  ;;  %v110_v20 = vld [vmem:[#allocation8 + $0x8] sm:$0xff]  ;;  %v99_v21 = vld [vmem:[#allocation6 + $0x30] sm:$0xff]  ;;  %v127_v22 = vmul.f32 %v102_v13, %v102_v13  ;;  %v128_v23 = vmul.f32 %v103_v14, %v103_v14  ;;  %v112_v25 = vld [vmem:[#allocation8 + $0x18] sm:$0xff]  ;;  %v106_v26 = vsub.f32 %v98_v12, %v90_v10  ;;  %p301_p13 = por %p300_p12, %p299_p11 }
  0x3c   :  { %v111_v24 = vld [vmem:[#allocation8 + $0x10] sm:$0xff]  ;;  %v113_v27 = vld [vmem:[#allocation8 + $0x20] sm:$0xff]  ;;  %v117_v28 = vsub.f32 %v109_v19, %v85_v0  ;;  %v92_v29 = vld [vmem:[#allocation3 + $0x38] sm:$0xff]  ;;  %v129_v31 = vmul.f32 %v104_v15, %v104_v15  ;;  %v118_v33 = vsub.f32 %v110_v20, %v86_v1  ;;  %v107_v35 = vsub.f32 %v99_v21, %v91_v16 }
  0x3d   :  { %v100_v30 = vld [vmem:[#allocation6 + $0x38] sm:$0xff]  ;;  %v134_v32 = vadd.f32 %v127_v22, %v126_v18  ;;  %v119_v34 = vsub.f32 %v111_v24, %v87_v2  ;;  %v130_v36 = vmul.f32 %v105_v17, %v105_v17  ;;  %v114_v37 = vld [vmem:[#allocation8 + $0x28] sm:$0xff]  ;;  %v120_v38 = vsub.f32 %v112_v25, %v88_v3  ;;  %v115_v45 = vld [vmem:[#allocation8 + $0x30] sm:$0xff]  ;;  %p302_p0 = pnand %p301_p13, %p295_p10 }
  0x3e   :  { %v121_v40 = vsub.f32 %v113_v27, %v89_v4  ;;  %v154_v41 = vmul.f32 %v117_v28, %v117_v28  ;;  %v155_v42 = vmul.f32 %v118_v33, %v118_v33  ;;  %v108_v43 = vsub.f32 %v100_v30, %v92_v29  ;;  %v116_v52 = vld [vmem:[#allocation8 + $0x38] sm:$0xff] }
  0x3f   :  { %v135_v39 = vadd.f32 %v134_v32, %v128_v23  ;;  %v131_v44 = vmul.f32 %v106_v26, %v106_v26  ;;  %v156_v46 = vmul.f32 %v119_v34, %v119_v34  ;;  %v122_v48 = vsub.f32 %v114_v37, %v90_v10 }
  0x40   :  { %v157_v49 = vmul.f32 %v120_v38, %v120_v38  ;;  %v162_v50 = vadd.f32 %v155_v42, %v154_v41  ;;  %v132_v51 = vmul.f32 %v107_v35, %v107_v35  ;;  %v123_v54 = vsub.f32 %v115_v45, %v91_v16 }
  0x41   :  { %v136_v47 = vadd.f32 %v135_v39, %v129_v31  ;;  %v158_v55 = vmul.f32 %v121_v40, %v121_v40  ;;  %v133_v57 = vmul.f32 %v108_v43, %v108_v43  ;;  %v124_v59 = vsub.f32 %v116_v52, %v92_v29 }
  0x42   :  { %v163_v56 = vadd.f32 %v162_v50, %v156_v46  ;;  %v159_v60 = vmul.f32 %v122_v48, %v122_v48  ;;  %v160_v63 = vmul.f32 %v123_v54, %v123_v54  ;;  %v184_v20 = vlaneseq }
  0x43   :  { %v137_v53 = vadd.f32 %v136_v47, %v130_v36  ;;  %v161_v2 = vmul.f32 %v124_v59, %v124_v59 }
  0x44   :  { %v164_v61 = vadd.f32 %v163_v56, %v157_v49  ;;  %v185_v21 = vshrl.u32 %v184_v20, 7  ;;  %v187_v22 = vand.u32 127, %v184_v20 }
  0x45   :  { %v138_v58 = vadd.f32 %v137_v53, %v131_v44 }
  0x46   :  { %v165_v0 = vadd.f32 %v164_v61, %v158_v55  ;;  %vm188_vm0 = vcmp.eq.s32.totalorder %v185_v21, 0  ;;  %vm192_vm1 = vcmp.eq.s32.totalorder %v187_v22, 1  ;;  %vm189_vm2 = vcmp.eq.s32.totalorder %v187_v22, 0 }
  0x47   :  { %v139_v62 = vadd.f32 %v138_v58, %v132_v51  ;;  %vm193_vm3 = vmand %vm188_vm0, %vm192_vm1 }
  0x48   :  { %v166_v3 = vadd.f32 %v165_v0, %v159_v60  ;;  %vm190_vm4 = vmand %vm188_vm0, %vm189_vm2 }
  0x49   :  { %v140_v1 = vadd.f32 %v139_v62, %v133_v57 }
  0x4a   :  { %v167_v4 = vadd.f32 %v166_v3, %v160_v63 }
  0x4b   :  { %141 = vadd.xlane.f32.xlu0 %v140_v1 }
  0x4c   :  { %v168_v5 = vadd.f32 %v167_v4, %v161_v2 }
  0x4f   :  { %169 = vadd.xlane.f32.xlu0 %v168_v5 }
  0xd8   :  { %v142_v6 = vpop.xlane.xlu0 %141 }
  0xd9   :  { %v143_v7 = vrot.slane %v142_v6, 4 }
  0xdb   :  { %v144_v8 = vadd.f32 %v143_v7, %v142_v6 }
  0xdc   :  { %v170_v9 = vpop.xlane.xlu0 %169 }
  0xdd   :  { %v145_v10 = vrot.slane %v144_v8, 2  ;;  %v171_v11 = vrot.slane %v170_v9, 4 }
  0xdf   :  { %v172_v12 = vadd.f32 %v171_v11, %v170_v9  ;;  %v146_v13 = vadd.f32 %v145_v10, %v144_v8 }
  0xe1   :  { %v173_v14 = vrot.slane %v172_v12, 2  ;;  %v147_v15 = vrot.slane %v146_v13, 1 }
  0xe3   :  { %v174_v16 = vadd.f32 %v173_v14, %v172_v12  ;;  %v148_v17 = vadd.f32 %v147_v15, %v146_v13 }
  0xe5   :  { %218 = vpush %v148_v17  ;;  %v175_v18 = vrot.slane %v174_v16, 1 }
  0xe7   :  { %v176_v19 = vadd.f32 %v175_v18, %v174_v16 }
  0xe9   :  { %220 = vpush %v176_v19 }
 0x116   :  { %s219_s2 = spop %218 }
 0x117   :  { %v197_v24 = vstv %s219_s2 }
 0x11a   :  { %s221_s23 = spop %220 }
 0x11b   :  { %v195_v23 = vstv %s221_s23 }
 0x11c   :  { %v196_v25 = vsel %vm193_vm3, %v195_v23, 0.0 }
 0x11d   :  { %v198_v26 = vsel %vm190_vm4, %v197_v24, %v196_v25 }
 0x11e   :  { %199 = vst [vmem:[#allocation9] sm:$0xff] %v198_v26 }
 0x11f   :  { %305 = shalt.err (!%p302_p0)
}
 0x120   :  { %s306_s27 = scalar_lea.hbm %s415_s3, 128 }
 0x121   :  { %p307_p1 = scmp.ne.s32.totalorder %s415_s3, %s306_s27  ;;  %p310_p2 = scmp.lt.u32.totalorder %s306_s27, %s415_s3 }
 0x123   :  { %p312_p3 = pnand %p310_p2, %p307_p1 }
 0x125   :  { %315 = shalt.err (!%p312_p3)
}
 0x126   :  { %209 = dma.vmem_to_hbm [thread:$0]  %s207_s22, 128, %s415_s3, [#allocation5]  }
 0x127   :  { %320 = dma.done.wait [#allocation5], 128  }
 0x128   :  { %321 = vsyncadd [#allocation5], 4294967168 }
 0x129   :  { %213 = vsyncpa [#allocation4], 1 }
 0x12a   :  { %214 = vsyncpa [#allocation7], 1 }
 0x12b   :  { %215 = vsyncpa [#allocation5], 1 }

</bundles_post_ra>
